<compile_context>
chip_gen: v6e
topology: v6e:2x2x1
jax: 0.10.0
libtpu: 0.0.40
codegen_flags: <defaults>
</compile_context>

<pallas_src>
import functools

import jax
import jax.numpy as jnp
from jax.experimental import pallas as pl
from jax.experimental.pallas import tpu as pltpu

n_actions = 4
n_hidden = 256
n_observations = 16


def _round_up(x, m):
    return ((x + m - 1) // m) * m


def _dqn_kernel(x_ref, w1_ref, b1_ref, w2_ref, b2_ref,
                w3_ref, b3_ref, w4_ref, b4_ref, o_ref):
    bf16 = jnp.bfloat16
    # bf16 MXU operands, f32 accumulation; bias-add / ReLU in f32 (VPU-portable).
    h = jnp.dot(x_ref[...].astype(bf16), w1_ref[...],
                preferred_element_type=jnp.float32) + b1_ref[...]
    h = jnp.maximum(h, 0.0)

    h = jnp.dot(h.astype(bf16), w2_ref[...],
                preferred_element_type=jnp.float32) + b2_ref[...]
    h = jnp.maximum(h, 0.0)

    h = jnp.dot(h.astype(bf16), w3_ref[...],
                preferred_element_type=jnp.float32) + b3_ref[...]
    h = jnp.maximum(h, 0.0)

    # Final layer: only n_actions (=4) useful columns, stored directly
    # (no lane padding written to HBM).
    out = jnp.dot(h.astype(bf16), w4_ref[...],
                  preferred_element_type=jnp.float32) + b4_ref[...]
    o_ref[...] = out.astype(o_ref.dtype)


def prepare_params(params):
    """One-time parameter prep: bf16 weights (in,out), f32 (1,out) biases.

    Doing this outside the jitted forward removes per-call cast/pad HBM passes.
    """
    bf16 = jnp.bfloat16
    prep = {}
    for i in range(1, 5):
        prep[f"w{i}"] = params[f"w{i}"].astype(bf16)
        prep[f"b{i}"] = params[f"b{i}"].astype(jnp.float32).reshape(1, -1)
    return prep


@functools.partial(jax.jit, static_argnames=("tb", "core_parallel"))
def dqn_forward(x, prep, *, tb=None, core_parallel=False):
    """x: (B, n_observations) float32. prep: output of prepare_params()."""
    B = x.shape[0]

    # Batch tile selection (sweepable via tb=):
    #  - B >= 2048: tb=1024 -> >=2 grid steps (pipelining / 2-TC headroom) while
    #    amortizing the ~0.35us per-step overhead over ~350 MFLOP of MXU work.
    #  - 128 <= B < 2048: one grid step, rounded to 128 (MXU-row aligned, v5e).
    #  - tiny B: round up to 16 (bf16 sublane tile), single step.
    if tb is None:
        if B >= 2048:
            tb = 1024
        elif B >= 128:
            tb = _round_up(B, 128)
        else:
            tb = _round_up(max(B, 1), 16)
    tb = max(16, _round_up(tb, 16))
    B_pad = _round_up(B, tb)

    if B_pad != B:
        x = jnp.pad(x, ((0, B_pad - B), (0, 0)))

    w1, b1 = prep["w1"], prep["b1"]
    w2, b2 = prep["w2"], prep["b2"]
    w3, b3 = prep["w3"], prep["b3"]
    w4, b4 = prep["w4"], prep["b4"]

    grid = (B_pad // tb,)

    # Weights/biases: constant block index -> fetched once, VMEM resident.
    const = lambda a: pl.BlockSpec(a.shape, lambda i: (0, 0))

    flops = 2 * B_pad * (n_observations * n_hidden
                         + 2 * n_hidden * n_hidden
                         + n_hidden * n_actions)
    bytes_accessed = (
        x.size * 4                                             # f32 input
        + (w1.size + w2.size + w3.size + w4.size) * 2          # bf16 weights
        + (b1.size + b2.size + b3.size + b4.size) * 4          # f32 biases
        + B_pad * n_actions * 4                                # f32 output
    )

    # Scoped-VMEM default (32 MiB) only binds at very large tiles; raise it then.
    vmem_limit = (64 * 1024 * 1024) if tb >= 2048 else None

    # v7x: core_parallel=True requests explicit 2-TensorCore sharding of the
    # batch axis; default keeps the portable "parallel" semantic.
    sem = (pltpu.CORE_PARALLEL,) if core_parallel else ("parallel",)

    out = pl.pallas_call(
        _dqn_kernel,
        out_shape=jax.ShapeDtypeStruct((B_pad, n_actions), jnp.float32),
        grid_spec=pl.GridSpec(
            grid=grid,
            in_specs=[
                pl.BlockSpec((tb, n_observations), lambda i: (i, 0)),
                const(w1), const(b1),
                const(w2), const(b2),
                const(w3), const(b3),
                const(w4), const(b4),
            ],
            out_specs=pl.BlockSpec((tb, n_actions), lambda i: (i, 0)),
        ),
        compiler_params=pltpu.CompilerParams(
            dimension_semantics=sem,
            vmem_limit_bytes=vmem_limit),
        cost_estimate=pl.CostEstimate(
            flops=flops, transcendentals=0, bytes_accessed=bytes_accessed),
    )(x, w1, b1, w2, b2, w3, b3, w4, b4)

    return out if B_pad == B else out[:B]


def init_params(key):
    """Deterministic init mimicking PyTorch's default Linear init
    (uniform(-1/sqrt(fan_in), 1/sqrt(fan_in))). Weights stored as (in, out)."""
    dims = [(n_observations, n_hidden),
            (n_hidden, n_hidden),
            (n_hidden, n_hidden),
            (n_hidden, n_actions)]
    params = {}
    keys = jax.random.split(key, 2 * len(dims))
    for i, (fan_in, fan_out) in enumerate(dims):
        bound = 1.0 / jnp.sqrt(jnp.float32(fan_in))
        params[f"w{i+1}"] = jax.random.uniform(
            keys[2 * i], (fan_in, fan_out), jnp.float32, -bound, bound)
        params[f"b{i+1}"] = jax.random.uniform(
            keys[2 * i + 1], (fan_out,), jnp.float32, -bound, bound)
    return params


def _ref_forward_f32(x, params):
    h = jnp.maximum(x @ params["w1"] + params["b1"], 0.0)
    h = jnp.maximum(h @ params["w2"] + params["b2"], 0.0)
    h = jnp.maximum(h @ params["w3"] + params["b3"], 0.0)
    return h @ params["w4"] + params["b4"]


def _ref_forward_bf16(x, params):
    """Pure-JAX reference that mirrors the kernel's precision choices."""
    bf = jnp.bfloat16

    def layer(h, w, b, relu):
        y = jnp.dot(h.astype(bf), w.astype(bf),
                    preferred_element_type=jnp.float32) + b
        return jnp.maximum(y, 0.0) if relu else y

    h = layer(x, params["w1"], params["b1"], True)
    h = layer(h, params["w2"], params["b2"], True)
    h = layer(h, params["w3"], params["b3"], True)
    return layer(h, params["w4"], params["b4"], False)


if __name__ == "__main__":
    key = jax.random.PRNGKey(0)
    pkey, xkey = jax.random.split(key)
    params = init_params(pkey)
    prep = prepare_params(params)   # one-time weight cast / bias reshape

    # Case 1: small batch, default tile (single grid step, tb rounded to 16).
    B = 12
    x = jax.random.normal(xkey, (B, n_observations), jnp.float32)
    out = jax.block_until_ready(dqn_forward(x, prep))
    assert out.shape == (B, n_actions), out.shape

    # Case 2: non-multiple batch with an explicit small tile to exercise the
    # multi-step grid + row-padding path (B=40, tb=16 -> B_pad=48, grid=(3,)).
    B2 = 40
    x2 = jax.random.normal(jax.random.fold_in(xkey, 1),
                           (B2, n_observations), jnp.float32)
    out2 = jax.block_until_ready(dqn_forward(x2, prep, tb=16))
    assert out2.shape == (B2, n_actions), out2.shape

    # Kernel-precision references (bf16 operands, f32 accumulate): tight check.
    ref1 = _ref_forward_bf16(x, params)
    ref2 = _ref_forward_bf16(x2, params)
    assert jnp.allclose(out, ref1, atol=2e-3, rtol=2e-3), \
        "mismatch vs bf16-precision reference (case 1)"
    assert jnp.allclose(out2, ref2, atol=2e-3, rtol=2e-3), \
        "mismatch vs bf16-precision reference (case 2)"

    # Full-f32 reference: loose check (bf16 matmul operands trade precision).
    ref_f32 = _ref_forward_f32(x, params)
    assert jnp.allclose(out, ref_f32, atol=5e-2, rtol=5e-2), \
        "mismatch vs f32 reference"

    print("KERNEL_OK")
</pallas_src>

<mosaic_0001>
module attributes {stable_mosaic.version = 11 : i64} {
  func.func @_dqn_kernel(%arg0: i32, %arg1: memref<16x16xf32, #tpu.memory_space<vmem>>, %arg2: memref<16x256xbf16, #tpu.memory_space<vmem>>, %arg3: memref<1x256xf32, #tpu.memory_space<vmem>>, %arg4: memref<256x256xbf16, #tpu.memory_space<vmem>>, %arg5: memref<1x256xf32, #tpu.memory_space<vmem>>, %arg6: memref<256x256xbf16, #tpu.memory_space<vmem>>, %arg7: memref<1x256xf32, #tpu.memory_space<vmem>>, %arg8: memref<256x4xbf16, #tpu.memory_space<vmem>>, %arg9: memref<1x4xf32, #tpu.memory_space<vmem>>, %arg10: memref<16x4xf32, #tpu.memory_space<vmem>>) attributes {dimension_semantics = [#tpu.dimension_semantics<parallel>], iteration_bounds = array<i64: 1>, scalar_prefetch = 0 : i64, scratch_operands = 0 : i64, tpu.core_type = #tpu.core_type<tc>, window_params = [{transform_indices = @transform_0, window_bounds = array<i64: 16, 16>}, {pipeline_mode = #tpu.pipeline_mode<synchronous>, transform_indices = @transform_1, window_bounds = array<i64: 16, 256>}, {pipeline_mode = #tpu.pipeline_mode<synchronous>, transform_indices = @transform_2, window_bounds = array<i64: 1, 256>}, {pipeline_mode = #tpu.pipeline_mode<synchronous>, transform_indices = @transform_3, window_bounds = array<i64: 256, 256>}, {pipeline_mode = #tpu.pipeline_mode<synchronous>, transform_indices = @transform_4, window_bounds = array<i64: 1, 256>}, {pipeline_mode = #tpu.pipeline_mode<synchronous>, transform_indices = @transform_5, window_bounds = array<i64: 256, 256>}, {pipeline_mode = #tpu.pipeline_mode<synchronous>, transform_indices = @transform_6, window_bounds = array<i64: 1, 256>}, {pipeline_mode = #tpu.pipeline_mode<synchronous>, transform_indices = @transform_7, window_bounds = array<i64: 256, 4>}, {pipeline_mode = #tpu.pipeline_mode<synchronous>, transform_indices = @transform_8, window_bounds = array<i64: 1, 4>}, {transform_indices = @transform_9, window_bounds = array<i64: 16, 4>}]} {
    %c0 = arith.constant 0 : index
    %c0_0 = arith.constant 0 : index
    %0 = vector.load %arg1[%c0, %c0_0] : memref<16x16xf32, #tpu.memory_space<vmem>>, vector<16x16xf32>
    %1 = arith.truncf %0 : vector<16x16xf32> to vector<16x16xbf16>
    %c0_1 = arith.constant 0 : index
    %c0_2 = arith.constant 0 : index
    %2 = vector.load %arg2[%c0_1, %c0_2] : memref<16x256xbf16, #tpu.memory_space<vmem>>, vector<16x256xbf16>
    %cst = arith.constant dense<0.000000e+00> : vector<16x256xf32>
    %3 = tpu.matmul %1, %2, %cst {dimension_numbers = #tpu.dot_dimension_numbers<[1], [0], [0], [1], [0, 0, 1, 1], [], []>} : vector<16x16xbf16>, vector<16x256xbf16>, vector<16x256xf32> -> vector<16x256xf32>
    %c0_3 = arith.constant 0 : index
    %c0_4 = arith.constant 0 : index
    %4 = vector.load %arg3[%c0_3, %c0_4] : memref<1x256xf32, #tpu.memory_space<vmem>>, vector<1x256xf32>
    %5 = vector.broadcast %4 : vector<1x256xf32> to vector<16x256xf32>
    %6 = arith.addf %3, %5 : vector<16x256xf32>
    %cst_5 = arith.constant 0.000000e+00 : f32
    %7 = vector.broadcast %cst_5 : f32 to vector<16x256xf32>
    %8 = arith.maximumf %6, %7 : vector<16x256xf32>
    %9 = arith.truncf %8 : vector<16x256xf32> to vector<16x256xbf16>
    %c0_6 = arith.constant 0 : index
    %c0_7 = arith.constant 0 : index
    %10 = vector.load %arg4[%c0_6, %c0_7] : memref<256x256xbf16, #tpu.memory_space<vmem>>, vector<256x256xbf16>
    %cst_8 = arith.constant dense<0.000000e+00> : vector<16x256xf32>
    %11 = tpu.matmul %9, %10, %cst_8 {dimension_numbers = #tpu.dot_dimension_numbers<[1], [0], [0], [1], [0, 0, 1, 1], [], []>} : vector<16x256xbf16>, vector<256x256xbf16>, vector<16x256xf32> -> vector<16x256xf32>
    %c0_9 = arith.constant 0 : index
    %c0_10 = arith.constant 0 : index
    %12 = vector.load %arg5[%c0_9, %c0_10] : memref<1x256xf32, #tpu.memory_space<vmem>>, vector<1x256xf32>
    %13 = vector.broadcast %12 : vector<1x256xf32> to vector<16x256xf32>
    %14 = arith.addf %11, %13 : vector<16x256xf32>
    %cst_11 = arith.constant 0.000000e+00 : f32
    %15 = vector.broadcast %cst_11 : f32 to vector<16x256xf32>
    %16 = arith.maximumf %14, %15 : vector<16x256xf32>
    %17 = arith.truncf %16 : vector<16x256xf32> to vector<16x256xbf16>
    %c0_12 = arith.constant 0 : index
    %c0_13 = arith.constant 0 : index
    %18 = vector.load %arg6[%c0_12, %c0_13] : memref<256x256xbf16, #tpu.memory_space<vmem>>, vector<256x256xbf16>
    %cst_14 = arith.constant dense<0.000000e+00> : vector<16x256xf32>
    %19 = tpu.matmul %17, %18, %cst_14 {dimension_numbers = #tpu.dot_dimension_numbers<[1], [0], [0], [1], [0, 0, 1, 1], [], []>} : vector<16x256xbf16>, vector<256x256xbf16>, vector<16x256xf32> -> vector<16x256xf32>
    %c0_15 = arith.constant 0 : index
    %c0_16 = arith.constant 0 : index
    %20 = vector.load %arg7[%c0_15, %c0_16] : memref<1x256xf32, #tpu.memory_space<vmem>>, vector<1x256xf32>
    %21 = vector.broadcast %20 : vector<1x256xf32> to vector<16x256xf32>
    %22 = arith.addf %19, %21 : vector<16x256xf32>
    %cst_17 = arith.constant 0.000000e+00 : f32
    %23 = vector.broadcast %cst_17 : f32 to vector<16x256xf32>
    %24 = arith.maximumf %22, %23 : vector<16x256xf32>
    %25 = arith.truncf %24 : vector<16x256xf32> to vector<16x256xbf16>
    %c0_18 = arith.constant 0 : index
    %c0_19 = arith.constant 0 : index
    %26 = vector.load %arg8[%c0_18, %c0_19] : memref<256x4xbf16, #tpu.memory_space<vmem>>, vector<256x4xbf16>
    %cst_20 = arith.constant dense<0.000000e+00> : vector<16x4xf32>
    %27 = tpu.matmul %25, %26, %cst_20 {dimension_numbers = #tpu.dot_dimension_numbers<[1], [0], [0], [1], [0, 0, 1, 1], [], []>} : vector<16x256xbf16>, vector<256x4xbf16>, vector<16x4xf32> -> vector<16x4xf32>
    %c0_21 = arith.constant 0 : index
    %c0_22 = arith.constant 0 : index
    %28 = vector.load %arg9[%c0_21, %c0_22] : memref<1x4xf32, #tpu.memory_space<vmem>>, vector<1x4xf32>
    %29 = vector.broadcast %28 : vector<1x4xf32> to vector<16x4xf32>
    %30 = arith.addf %27, %29 : vector<16x4xf32>
    %c0_23 = arith.constant 0 : index
    %c0_24 = arith.constant 0 : index
    %31 = vector.load %arg10[%c0_23, %c0_24] : memref<16x4xf32, #tpu.memory_space<vmem>>, vector<16x4xf32>
    tpu.vector_store %arg10[%c0_23, %c0_24], %30 {strides = array<i32>} : memref<16x4xf32, #tpu.memory_space<vmem>>, vector<16x4xf32>,
    return
  }
  func.func @transform_0(%arg0: i32) -> (i32, i32) {
    %c0_i32 = arith.constant 0 : i32
    %c0_i32_0 = arith.constant 0 : i32
    return %arg0, %c0_i32 : i32, i32
  }
  func.func @transform_1(%arg0: i32) -> (i32, i32) {
    %c0_i32 = arith.constant 0 : i32
    %c0_i32_0 = arith.constant 0 : i32
    %c0_i32_1 = arith.constant 0 : i32
    return %c0_i32, %c0_i32_0 : i32, i32
  }
  func.func @transform_2(%arg0: i32) -> (i32, i32) {
    %c0_i32 = arith.constant 0 : i32
    %c0_i32_0 = arith.constant 0 : i32
    %c0_i32_1 = arith.constant 0 : i32
    return %c0_i32, %c0_i32_0 : i32, i32
  }
  func.func @transform_3(%arg0: i32) -> (i32, i32) {
    %c0_i32 = arith.constant 0 : i32
    %c0_i32_0 = arith.constant 0 : i32
    %c0_i32_1 = arith.constant 0 : i32
    return %c0_i32, %c0_i32_0 : i32, i32
  }
  func.func @transform_4(%arg0: i32) -> (i32, i32) {
    %c0_i32 = arith.constant 0 : i32
    %c0_i32_0 = arith.constant 0 : i32
    %c0_i32_1 = arith.constant 0 : i32
    return %c0_i32, %c0_i32_0 : i32, i32
  }
  func.func @transform_5(%arg0: i32) -> (i32, i32) {
    %c0_i32 = arith.constant 0 : i32
    %c0_i32_0 = arith.constant 0 : i32
    %c0_i32_1 = arith.constant 0 : i32
    return %c0_i32, %c0_i32_0 : i32, i32
  }
  func.func @transform_6(%arg0: i32) -> (i32, i32) {
    %c0_i32 = arith.constant 0 : i32
    %c0_i32_0 = arith.constant 0 : i32
    %c0_i32_1 = arith.constant 0 : i32
    return %c0_i32, %c0_i32_0 : i32, i32
  }
  func.func @transform_7(%arg0: i32) -> (i32, i32) {
    %c0_i32 = arith.constant 0 : i32
    %c0_i32_0 = arith.constant 0 : i32
    %c0_i32_1 = arith.constant 0 : i32
    return %c0_i32, %c0_i32_0 : i32, i32
  }
  func.func @transform_8(%arg0: i32) -> (i32, i32) {
    %c0_i32 = arith.constant 0 : i32
    %c0_i32_0 = arith.constant 0 : i32
    %c0_i32_1 = arith.constant 0 : i32
    return %c0_i32, %c0_i32_0 : i32, i32
  }
  func.func @transform_9(%arg0: i32) -> (i32, i32) {
    %c0_i32 = arith.constant 0 : i32
    %c0_i32_0 = arith.constant 0 : i32
    return %arg0, %c0_i32 : i32, i32
  }
}

</mosaic_0001>

<bundles_post_ra>
// kernel: dqn_forward.1
= control target key start
LH: loop header
LB: loop body
LE: loop exit
PB: predicated region body
PF: predicated region fallthrough
CT: control target
= control target key end

     0   :  { %14 = vsyncpa [#allocation3], 0  ;;  %s1251_s0 = inlined_call_operand.vmem [shape: f32[16,16], index: 0, kind: input, shape index: {}]   ;;  %s1252_s1 = inlined_call_operand.vmem [shape: bf16[16,256], index: 1, kind: input, shape index: {}]   ;;  %s1253_s2 = inlined_call_operand.vmem [shape: f32[1,256], index: 2, kind: input, shape index: {}]   ;;  %s1254_s3 = inlined_call_operand.hbm [shape: bf16[256,256], index: 3, kind: input, shape index: {}]   ;;  %s1255_s4 = inlined_call_operand.vmem [shape: f32[1,256], index: 4, kind: input, shape index: {}]   ;;  %s1256_s5 = inlined_call_operand.hbm [shape: bf16[256,256], index: 5, kind: input, shape index: {}]   ;;  %s1257_s6 = inlined_call_operand.vmem [shape: f32[1,256], index: 6, kind: input, shape index: {}]   ;;  %s1258_s7 = inlined_call_operand.vmem [shape: bf16[256,4], index: 7, kind: input, shape index: {}]   ;;  %s1259_s8 = inlined_call_operand.vmem [shape: f32[1,4], index: 8, kind: input, shape index: {}]   ;;  %s1260_s9 = inlined_call_operand.vmem [shape: f32[16,4], index: 9, kind: output, shape index: {}]  }
   0x1   :  { %15 = vsyncpa [#allocation5], 0  ;;  %s1102_s30 = smov [#allocation2]  }
   0x2   :  { %s27_s10 = sshll.u32 %s1102_s30, 4  ;;  %s28_s10 = int_to_ptr.vmem [resolvable:$true] %s27_s10 }
   0x3   :  { %s1066_s11 = scalar_lea.vmem %s28_s10, 4096  ;;  %p1071_p1 = scmp.lt.s32.totalorder %s28_s10, %s28_s10 }
   0x4   :  { %p1067_p0 = scmp.ne.s32.totalorder %s28_s10, %s1066_s11  ;;  %p1072_p2 = scmp.lt.s32.totalorder %s1066_s11, %s1066_s11 }
   0x6   :  { %p1073_p3 = por %p1072_p2, %p1071_p1 }
   0x8   :  { %p1074_p4 = pnand %p1073_p3, %p1067_p0 }
   0xa   :  { %1077 = shalt.err (!%p1074_p4)
}
   0xb   :  { %s1103_s12 = smov 128   ;;  %s1104_s13 = smov 8  }
   0xc   :  { %33 = dma.hbm_to_vmem [thread:$0]  %s1254_s3, 4096, %s28_s10, [#allocation3], %s1103_s12, %s1103_s12, %s1104_s13  }
   0xd   :  { %s1105_s16 = smov [#allocation4]  }
   0xe   :  { %s41_s17 = sshll.u32 %s1105_s16, 4  ;;  %s42_s17 = int_to_ptr.vmem [resolvable:$true] %s41_s17 }
   0xf   :  { %s1086_s18 = scalar_lea.vmem %s42_s17, 4096  ;;  %p1091_p6 = scmp.lt.s32.totalorder %s42_s17, %s42_s17 }
  0x10   :  { %p1087_p5 = scmp.ne.s32.totalorder %s42_s17, %s1086_s18  ;;  %p1092_p7 = scmp.lt.s32.totalorder %s1086_s18, %s1086_s18 }
  0x12   :  { %p1093_p8 = por %p1092_p7, %p1091_p6 }
  0x14   :  { %p1094_p9 = pnand %p1093_p8, %p1087_p5 }
  0x16   :  { %1097 = shalt.err (!%p1094_p9)
}
  0x17   :  { %47 = dma.hbm_to_vmem [thread:$0]  %s1256_s5, 4096, %s42_s17, [#allocation5], %s1103_s12, %s1103_s12, %s1104_s13  }
  0x18   :  { %1098 = dma.done.wait [#allocation3], 4096  }
  0x19   :  { %1099 = vsyncadd [#allocation3], 4294963200 }
  0x1a   :  { %1100 = dma.done.wait [#allocation5], 4096  }
  0x1b   :  { %1101 = vsyncadd [#allocation5], 4294963200  ;;  %v1106_v0 = vmov 0   ;;  %v943_v1 = vld [vmem:[%s1252_s1 + $0x4] ss:$8 sps:$4 sm:$0xff]   ;;  %vm88_vm0 = vcmask 130048  }
  0x1c   :  { %124 = vmatprep.mubr.bf16.mxu0 %v1106_v0  ;;  %v945_v2 = vld [vmem:[%s1252_s1] ss:$8 sps:$4 sm:$0xff]   ;;  %106 = vmatprep.subr.bf16.mxu0 %v943_v1  ;;  %v946_v6 = vld [vmem:[#allocation2 + $0x74] ss:$8 sps:$4 sm:$0xff]   ;;  %v948_v7 = vld [vmem:[#allocation2 + $0x70] ss:$8 sps:$4 sm:$0xff]   ;;  %v68_v0 = vlaneseq }
  0x1d   :  { %v61_v3 = vld [vmem:[%s1251_s0] sm:$0xff]  ;;  %v62_v4 = vld [vmem:[%s1251_s0 + $0x8] sm:$0xff]  ;;  %107 = vmatpush1.bf16.msra.mxu0 %v945_v2  ;;  %345 = vmatprep.subr.bf16.mxu1 %v946_v6  ;;  %v952_v10 = vld [vmem:[#allocation2 + $0x54] ss:$8 sps:$4 sm:$0xff]   ;;  %vm823_vm1 = vcmask 31744  }
  0x1e   :  { %v63_v5 = vpack.c.bf16 %v62_v4, %v61_v3  ;;  %v949_v8 = vld [vmem:[#allocation2 + $0x64] ss:$8 sps:$4 sm:$0xff]   ;;  %346 = vmatpush1.bf16.msra.mxu1 %v948_v7  ;;  %v951_v9 = vld [vmem:[#allocation2 + $0x60] ss:$8 sps:$4 sm:$0xff]   ;;  %v954_v11 = vld [vmem:[#allocation2 + $0x50] ss:$8 sps:$4 sm:$0xff]  }
  0x1f   :  { %347 = vmatprep.subr.bf16.mxu1 %v949_v8  ;;  %v955_v12 = vld [vmem:[#allocation2 + $0x44] ss:$8 sps:$4 sm:$0xff]   ;;  %v957_v13 = vld [vmem:[#allocation2 + $0x40] ss:$8 sps:$4 sm:$0xff]   ;;  %v958_v14 = vld [vmem:[#allocation2 + $0x34] ss:$8 sps:$4 sm:$0xff]  }
  0x20   :  { %834 = vmatmul.mubr.msk.bf16.vlgmr.msra.gmra.mxu0 %vm88_vm0, %v63_v5  ;;  %v960_v15 = vld [vmem:[#allocation2 + $0x30] ss:$8 sps:$4 sm:$0xff]   ;;  %v961_v16 = vld [vmem:[#allocation2 + $0x24] ss:$8 sps:$4 sm:$0xff]   ;;  %v963_v17 = vld [vmem:[#allocation2 + $0x20] ss:$8 sps:$4 sm:$0xff]  }
  0x21   :  { %v964_v18 = vld [vmem:[#allocation2 + $0x14] ss:$8 sps:$4 sm:$0xff]   ;;  %v966_v19 = vld [vmem:[#allocation2 + $0x10] ss:$8 sps:$4 sm:$0xff]   ;;  %v967_v20 = vld [vmem:[#allocation2 + $0x4] ss:$8 sps:$4 sm:$0xff]  }
  0x22   :  { %348 = vmatpush1.bf16.msra.mxu1 %v951_v9  ;;  %v969_v21 = vld [vmem:[#allocation2] ss:$8 sps:$4 sm:$0xff]   ;;  %v970_v22 = vld [vmem:[#allocation2 + $0xf4] ss:$8 sps:$4 sm:$0xff]   ;;  %v972_v23 = vld [vmem:[#allocation2 + $0xf0] ss:$8 sps:$4 sm:$0xff]  }
  0x23   :  { %349 = vmatprep.subr.bf16.mxu1 %v952_v10  ;;  %v973_v24 = vld [vmem:[#allocation2 + $0xe4] ss:$8 sps:$4 sm:$0xff]   ;;  %v975_v25 = vld [vmem:[#allocation2 + $0xe0] ss:$8 sps:$4 sm:$0xff]   ;;  %v976_v26 = vld [vmem:[#allocation2 + $0xd4] ss:$8 sps:$4 sm:$0xff]  }
  0x24   :  { %v978_v27 = vld [vmem:[#allocation2 + $0xd0] ss:$8 sps:$4 sm:$0xff]   ;;  %v979_v28 = vld [vmem:[#allocation2 + $0xc4] ss:$8 sps:$4 sm:$0xff]   ;;  %v981_v29 = vld [vmem:[#allocation2 + $0xc0] ss:$8 sps:$4 sm:$0xff]  }
  0x25   :  { %v982_v30 = vld [vmem:[#allocation2 + $0xb4] ss:$8 sps:$4 sm:$0xff]   ;;  %v984_v31 = vld [vmem:[#allocation2 + $0xb0] ss:$8 sps:$4 sm:$0xff]   ;;  %v985_v32 = vld [vmem:[#allocation2 + $0xa4] ss:$8 sps:$4 sm:$0xff]  }
  0x26   :  { %350 = vmatpush1.bf16.msra.mxu1 %v954_v11  ;;  %v987_v33 = vld [vmem:[#allocation2 + $0xa0] ss:$8 sps:$4 sm:$0xff]   ;;  %v988_v34 = vld [vmem:[#allocation2 + $0x94] ss:$8 sps:$4 sm:$0xff]   ;;  %v990_v35 = vld [vmem:[#allocation2 + $0x90] ss:$8 sps:$4 sm:$0xff]  }
  0x27   :  { %351 = vmatprep.subr.bf16.mxu1 %v955_v12  ;;  %v991_v36 = vld [vmem:[#allocation2 + $0x84] ss:$8 sps:$4 sm:$0xff]   ;;  %v993_v37 = vld [vmem:[#allocation2 + $0x80] ss:$8 sps:$4 sm:$0xff]   ;;  %v994_v38 = vld [vmem:[#allocation4 + $0x70] ss:$8 sps:$4 sm:$0xff]  }
  0x28   :  { %v996_v39 = vld [vmem:[#allocation4 + $0x74] ss:$8 sps:$4 sm:$0xff]   ;;  %v999_v40 = vld [vmem:[#allocation4 + $0x64] ss:$8 sps:$4 sm:$0xff]   ;;  %v997_v41 = vld [vmem:[#allocation4 + $0x60] ss:$8 sps:$4 sm:$0xff]  }
  0x29   :  { %598 = vmatprep.subr.bf16.mxu0 %v996_v39  ;;  %v1002_v42 = vld [vmem:[#allocation4 + $0x54] ss:$8 sps:$4 sm:$0xff]   ;;  %v1000_v43 = vld [vmem:[#allocation4 + $0x50] ss:$8 sps:$4 sm:$0xff]   ;;  %v1005_v44 = vld [vmem:[#allocation4 + $0x44] ss:$8 sps:$4 sm:$0xff]  }
  0x2a   :  { %352 = vmatpush1.bf16.msra.mxu1 %v957_v13  ;;  %599 = vmatpush1.bf16.msra.mxu0 %v994_v38  ;;  %v1003_v45 = vld [vmem:[#allocation4 + $0x40] ss:$8 sps:$4 sm:$0xff]   ;;  %v1008_v46 = vld [vmem:[#allocation4 + $0x34] ss:$8 sps:$4 sm:$0xff]   ;;  %v1006_v47 = vld [vmem:[#allocation4 + $0x30] ss:$8 sps:$4 sm:$0xff]  }
  0x2b   :  { %353 = vmatprep.subr.bf16.mxu1 %v958_v14  ;;  %600 = vmatprep.subr.bf16.mxu0 %v999_v40  ;;  %v1011_v48 = vld [vmem:[#allocation4 + $0x24] ss:$8 sps:$4 sm:$0xff]   ;;  %v1009_v49 = vld [vmem:[#allocation4 + $0x20] ss:$8 sps:$4 sm:$0xff]   ;;  %v1014_v50 = vld [vmem:[#allocation4 + $0x14] ss:$8 sps:$4 sm:$0xff]  }
  0x2c   :  { %v1012_v51 = vld [vmem:[#allocation4 + $0x10] ss:$8 sps:$4 sm:$0xff]   ;;  %v1017_v52 = vld [vmem:[#allocation4 + $0x4] ss:$8 sps:$4 sm:$0xff]   ;;  %v1015_v53 = vld [vmem:[#allocation4] ss:$8 sps:$4 sm:$0xff]  }
  0x2d   :  { %v1020_v54 = vld [vmem:[#allocation4 + $0xf4] ss:$8 sps:$4 sm:$0xff]   ;;  %v1018_v55 = vld [vmem:[#allocation4 + $0xf0] ss:$8 sps:$4 sm:$0xff]   ;;  %v1023_v56 = vld [vmem:[#allocation4 + $0xe4] ss:$8 sps:$4 sm:$0xff]  }
  0x2e   :  { %354 = vmatpush1.bf16.msra.mxu1 %v960_v15  ;;  %601 = vmatpush1.bf16.msra.mxu0 %v997_v41  ;;  %v1021_v57 = vld [vmem:[#allocation4 + $0xe0] ss:$8 sps:$4 sm:$0xff]   ;;  %v1026_v58 = vld [vmem:[#allocation4 + $0xd4] ss:$8 sps:$4 sm:$0xff]   ;;  %v1024_v59 = vld [vmem:[#allocation4 + $0xd0] ss:$8 sps:$4 sm:$0xff]  }
  0x2f   :  { %355 = vmatprep.subr.bf16.mxu1 %v961_v16  ;;  %602 = vmatprep.subr.bf16.mxu0 %v1002_v42  ;;  %v1029_v60 = vld [vmem:[#allocation4 + $0xc4] ss:$8 sps:$4 sm:$0xff]   ;;  %v1027_v61 = vld [vmem:[#allocation4 + $0xc0] ss:$8 sps:$4 sm:$0xff]   ;;  %v1032_v62 = vld [vmem:[#allocation4 + $0xb4] ss:$8 sps:$4 sm:$0xff]  }
  0x30   :  { %v1030_v63 = vld [vmem:[#allocation4 + $0xb0] ss:$8 sps:$4 sm:$0xff]   ;;  %v69_v1 = vshrl.u32 %v68_v0, 7  ;;  %v66_v4 = vld [vmem:[%s1253_s2] sm:$0x3] }
  0x32   :  { %356 = vmatpush1.bf16.msra.mxu1 %v963_v17  ;;  %603 = vmatpush1.bf16.msra.mxu0 %v1000_v43  ;;  %v1175_v2 = vsub.s32 1, %v69_v1  ;;  %v1177_v3 = vsub.s32 0, %v69_v1 }
  0x33   :  { %357 = vmatprep.subr.bf16.mxu1 %v964_v18  ;;  %604 = vmatprep.subr.bf16.mxu0 %v1005_v44 }
  0x34   :  { %v75_v6 = vrot.slane %v66_v4, %v1175_v2  ;;  %v71_v7 = vrot.slane %v66_v4, %v1177_v3 }
  0x36   :  { %358 = vmatpush1.bf16.msra.mxu1 %v966_v19  ;;  %605 = vmatpush1.bf16.msra.mxu0 %v1003_v45 }
  0x37   :  { %359 = vmatprep.subr.bf16.mxu1 %v967_v20  ;;  %606 = vmatprep.subr.bf16.mxu0 %v1008_v46 }
  0x3a   :  { %360 = vmatpush1.bf16.msra.mxu1 %v969_v21  ;;  %607 = vmatpush1.bf16.msra.mxu0 %v1006_v47  ;;  %v1035_v21 = vld [vmem:[#allocation4 + $0xa4] ss:$8 sps:$4 sm:$0xff]  }
  0x3b   :  { %361 = vmatprep.subr.bf16.mxu1 %v970_v22  ;;  %608 = vmatprep.subr.bf16.mxu0 %v1011_v48  ;;  %v1033_v22 = vld [vmem:[#allocation4 + $0xa0] ss:$8 sps:$4 sm:$0xff]  }
  0x3e   :  { %362 = vmatpush2.bf16.msra.mxu1 %v972_v23  ;;  %609 = vmatpush1.bf16.msra.mxu0 %v1009_v49  ;;  %v1038_v23 = vld [vmem:[#allocation4 + $0x94] ss:$8 sps:$4 sm:$0xff]  }
  0x3f   :  { %363 = vmatprep.subr.bf16.mxu1 %v973_v24  ;;  %610 = vmatprep.subr.bf16.mxu0 %v1014_v50  ;;  %v1036_v24 = vld [vmem:[#allocation4 + $0x90] ss:$8 sps:$4 sm:$0xff]  }
  0x42   :  { %364 = vmatpush2.bf16.msra.mxu1 %v975_v25  ;;  %611 = vmatpush1.bf16.msra.mxu0 %v1012_v51  ;;  %v1041_v25 = vld [vmem:[#allocation4 + $0x84] ss:$8 sps:$4 sm:$0xff]  }
  0x43   :  { %365 = vmatprep.subr.bf16.mxu1 %v976_v26  ;;  %612 = vmatprep.subr.bf16.mxu0 %v1017_v52  ;;  %v1039_v26 = vld [vmem:[#allocation4 + $0x80] ss:$8 sps:$4 sm:$0xff]  }
  0x46   :  { %366 = vmatpush2.bf16.msra.mxu1 %v978_v27  ;;  %613 = vmatpush1.bf16.msra.mxu0 %v1015_v53  ;;  %v1042_v27 = vld [vmem:[%s1258_s7 + $0x78] sm:$0xff]  }
  0x47   :  { %367 = vmatprep.subr.bf16.mxu1 %v979_v28  ;;  %614 = vmatprep.subr.bf16.mxu0 %v1020_v54  ;;  %v1043_v28 = vld [vmem:[%s1258_s7 + $0x38] sm:$0xff]   ;;  %v1052_v54 = vld [vmem:[%s1258_s7 + $0x50] sm:$0xff]  }
  0x4a   :  { %368 = vmatpush2.bf16.msra.mxu1 %v981_v29  ;;  %615 = vmatpush2.bf16.msra.mxu0 %v1018_v55  ;;  %v1044_v29 = vld [vmem:[%s1258_s7 + $0x70] sm:$0xff]  }
  0x4b   :  { %369 = vmatprep.subr.bf16.mxu1 %v982_v30  ;;  %616 = vmatprep.subr.bf16.mxu0 %v1023_v56  ;;  %v1045_v30 = vld [vmem:[%s1258_s7 + $0x30] sm:$0xff]   ;;  %v1054_v56 = vld [vmem:[%s1258_s7 + $0x48] sm:$0xff]  }
  0x4c   :  { %v1053_v55 = vld [vmem:[%s1258_s7 + $0x10] sm:$0xff]  }
  0x4e   :  { %370 = vmatpush2.bf16.msra.mxu1 %v984_v31  ;;  %617 = vmatpush2.bf16.msra.mxu0 %v1021_v57  ;;  %v1046_v31 = vld [vmem:[%s1258_s7 + $0x68] sm:$0xff]  }
  0x4f   :  { %371 = vmatprep.subr.bf16.mxu1 %v985_v32  ;;  %618 = vmatprep.subr.bf16.mxu0 %v1026_v58  ;;  %v1047_v32 = vld [vmem:[%s1258_s7 + $0x28] sm:$0xff]   ;;  %v1056_v58 = vld [vmem:[%s1258_s7 + $0x40] sm:$0xff]  }
  0x50   :  { %v1055_v57 = vld [vmem:[%s1258_s7 + $0x8] sm:$0xff]  }
  0x52   :  { %372 = vmatpush2.bf16.msra.mxu1 %v987_v33  ;;  %619 = vmatpush2.bf16.msra.mxu0 %v1024_v59  ;;  %v1048_v33 = vld [vmem:[%s1258_s7 + $0x60] sm:$0xff]  }
  0x53   :  { %373 = vmatprep.subr.bf16.mxu1 %v988_v34  ;;  %620 = vmatprep.subr.bf16.mxu0 %v1029_v60  ;;  %v1049_v34 = vld [vmem:[%s1258_s7 + $0x20] sm:$0xff]  }
  0x54   :  { %v1057_v59 = vld [vmem:[%s1258_s7] sm:$0xff]  }
  0x55   :  { %v426_v60 = vld [vmem:[%s1257_s6] sm:$0x3] }
  0x56   :  { %374 = vmatpush2.bf16.msra.mxu1 %v990_v35  ;;  %621 = vmatpush2.bf16.msra.mxu0 %v1027_v61  ;;  %v1050_v35 = vld [vmem:[%s1258_s7 + $0x58] sm:$0xff]  }
  0x57   :  { %375 = vmatprep.subr.bf16.mxu1 %v991_v36  ;;  %622 = vmatprep.subr.bf16.mxu0 %v1032_v62  ;;  %v1051_v36 = vld [vmem:[%s1258_s7 + $0x18] sm:$0xff]   ;;  %v435_v62 = vrot.slane %v426_v60, %v1175_v2 }
  0x5a   :  { %376 = vmatpush2.bf16.msra.mxu1 %v993_v37  ;;  %623 = vmatpush2.bf16.msra.mxu0 %v1030_v63  ;;  %v173_v37 = vld [vmem:[%s1255_s4] sm:$0x3]  ;;  %v431_v63 = vrot.slane %v426_v60, %v1177_v3 }
  0x5b   :  { %624 = vmatprep.subr.bf16.mxu0 %v1035_v21  ;;  %916 = vmatprep.subr.bf16.mxu1 %v1042_v27  ;;  %v182_v39 = vrot.slane %v173_v37, %v1175_v2  ;;  %v178_v40 = vrot.slane %v173_v37, %v1177_v3  ;;  %v899_v2 = vld [vmem:[%s1259_s8] ss:$0 sm:$0xff] }
  0x5e   :  { %625 = vmatpush2.bf16.msra.mxu0 %v1033_v22 }
  0x5f   :  { %626 = vmatprep.subr.bf16.mxu0 %v1038_v23 }
  0x62   :  { %627 = vmatpush2.bf16.msra.mxu0 %v1036_v24 }
  0x63   :  { %628 = vmatprep.subr.bf16.mxu0 %v1041_v25 }
  0x66   :  { %629 = vmatpush2.bf16.msra.mxu0 %v1039_v26 }
  0xe0   :  { %v126_v5 = vpop.f32.mrf.mxu0 }
  0xe1   :  { %v127_v12 = vadd.f32 %v126_v5, %v71_v7 }
  0xe2   :  { %v128_v8 = vpop.f32.mrf.mxu0 }
  0xe3   :  { %v129_v10 = vadd.f32 %v128_v8, %v75_v6  ;;  %v135_v18 = vmax.f32 %v127_v12, 0.0 }
  0xe4   :  { %v130_v9 = vpop.f32.mrf.mxu0 }
  0xe5   :  { %v131_v11 = vadd.f32 %v130_v9, %v71_v7  ;;  %v136_v16 = vmax.f32 %v129_v10, 0.0 }
  0xe6   :  { %v132_v13 = vpop.f32.mrf.mxu0 }
  0xe7   :  { %v133_v14 = vadd.f32 %v132_v13, %v75_v6  ;;  %v137_v15 = vmax.f32 %v131_v11, 0.0 }
  0xe9   :  { %v138_v17 = vmax.f32 %v133_v14, 0.0  ;;  %v139_v20 = vpack.c.bf16 %v137_v15, %v135_v18 }
  0xeb   :  { %v140_v19 = vpack.c.bf16 %v138_v17, %v136_v16 }
  0xed   :  { %377 = vmatprep.mubr.bf16.mxu1 %v140_v19 }
  0xee   :  { %378 = vmatmul.mubr.bf16.vlgmr.msra.gmra.mxu1 %v139_v20 }
  0xef   :  { %917 = vmatpush3.bf16.msra.mxu1 %v1043_v28 }
  0xf0   :  { %918 = vmatprep.subr.bf16.mxu1 %v1044_v29 }
  0xf3   :  { %919 = vmatpush3.bf16.msra.mxu1 %v1045_v30 }
  0xf4   :  { %920 = vmatprep.subr.bf16.mxu1 %v1046_v31 }
  0xf7   :  { %921 = vmatpush3.bf16.msra.mxu1 %v1047_v32 }
  0xf8   :  { %922 = vmatprep.subr.bf16.mxu1 %v1048_v33 }
  0xfb   :  { %923 = vmatpush3.bf16.msra.mxu1 %v1049_v34 }
  0xfc   :  { %924 = vmatprep.subr.bf16.mxu1 %v1050_v35 }
  0xff   :  { %925 = vmatpush3.bf16.msra.mxu1 %v1051_v36 }
 0x100   :  { %926 = vmatprep.subr.bf16.mxu1 %v1052_v54 }
 0x103   :  { %927 = vmatpush3.bf16.msra.mxu1 %v1053_v55 }
 0x104   :  { %928 = vmatprep.subr.bf16.mxu1 %v1054_v56 }
 0x107   :  { %929 = vmatpush3.bf16.msra.mxu1 %v1055_v57 }
 0x108   :  { %930 = vmatprep.subr.bf16.mxu1 %v1056_v58 }
 0x10b   :  { %931 = vmatpush3.bf16.msra.mxu1 %v1057_v59 }
 0x1ae   :  { %v379_v38 = vpop.f32.mrf.mxu1 }
 0x1af   :  { %v380_v45 = vadd.f32 %v379_v38, %v178_v40 }
 0x1b0   :  { %v381_v41 = vpop.f32.mrf.mxu1 }
 0x1b1   :  { %v382_v43 = vadd.f32 %v381_v41, %v182_v39  ;;  %v388_v51 = vmax.f32 %v380_v45, 0.0 }
 0x1b2   :  { %v383_v42 = vpop.f32.mrf.mxu1 }
 0x1b3   :  { %v384_v44 = vadd.f32 %v383_v42, %v178_v40  ;;  %v389_v49 = vmax.f32 %v382_v43, 0.0 }
 0x1b4   :  { %v385_v46 = vpop.f32.mrf.mxu1 }
 0x1b5   :  { %v386_v47 = vadd.f32 %v385_v46, %v182_v39  ;;  %v390_v48 = vmax.f32 %v384_v44, 0.0 }
 0x1b7   :  { %v391_v50 = vmax.f32 %v386_v47, 0.0  ;;  %v392_v53 = vpack.c.bf16 %v390_v48, %v388_v51 }
 0x1b9   :  { %v393_v52 = vpack.c.bf16 %v391_v50, %v389_v49 }
 0x1bb   :  { %630 = vmatprep.mubr.bf16.mxu0 %v393_v52 }
 0x1bc   :  { %631 = vmatmul.mubr.bf16.vlgmr.msra.gmra.mxu0 %v392_v53 }
 0x27c   :  { %v632_v61 = vpop.f32.mrf.mxu0 }
 0x27d   :  { %v633_v6 = vadd.f32 %v632_v61, %v431_v63 }
 0x27e   :  { %v634_v0 = vpop.f32.mrf.mxu0 }
 0x27f   :  { %v635_v4 = vadd.f32 %v634_v0, %v435_v62  ;;  %v641_v12 = vmax.f32 %v633_v6, 0.0 }
 0x280   :  { %v636_v1 = vpop.f32.mrf.mxu0 }
 0x281   :  { %v637_v5 = vadd.f32 %v636_v1, %v431_v63  ;;  %v642_v10 = vmax.f32 %v635_v4, 0.0 }
 0x282   :  { %v638_v7 = vpop.f32.mrf.mxu0 }
 0x283   :  { %v639_v8 = vadd.f32 %v638_v7, %v435_v62  ;;  %v643_v9 = vmax.f32 %v637_v5, 0.0 }
 0x285   :  { %v644_v11 = vmax.f32 %v639_v8, 0.0  ;;  %v645_v14 = vpack.c.bf16 %v643_v9, %v641_v12 }
 0x287   :  { %v646_v13 = vpack.c.bf16 %v644_v11, %v642_v10 }
 0x289   :  { %814 = vmatprep.mubr.bf16.mxu1 %v646_v13 }
 0x28a   :  { %815 = vmatmul.mubr.bf16.vlgmr.msra.gmra.mxu1 %v645_v14 }
 0x34a   :  { %v932_v15 = vpop.f32.mrf.mxu1 }
 0x34c   :  { %v933_v3 = vpop.f32.mrf.mxu1 }
 0x34d   :  { %v934_v16 = vadd.f32 %v933_v3, %v932_v15 }
 0x34e   :  { %v935_v17 = vpop.f32.mrf.mxu1 }
 0x34f   :  { %v817_v18 = vadd.f32 %v934_v16, %v899_v2 }
 0x350   :  { %v936_v19 = vpop.f32.mrf.mxu1 }
 0x351   :  { %824 = vst.msk [vmem:[%s1260_s9] sm:$0xff] %vm823_vm1, %v817_v18  ;;  %v937_v20 = vadd.f32 %v936_v19, %v935_v17 }
 0x353   :  { %v820_v21 = vadd.f32 %v937_v20, %v899_v2 }
 0x355   :  { %825 = vst.msk [vmem:[%s1260_s9 + $0x8] sm:$0xff] %vm823_vm1, %v820_v21 }
 0x356   :  { %830 = vsyncpa [#allocation3], 1 }
 0x357   :  { %831 = vsyncpa [#allocation5], 1 }

</bundles_post_ra>
